<compile_context>
chip_gen: v6e
topology: v6e:2x2x1
jax: 0.10.0
libtpu: 0.0.40
codegen_flags: <defaults>
</compile_context>

<pallas_src>
import functools

import jax
import jax.numpy as jnp
from jax.experimental import pallas as pl
from jax.experimental.pallas import tpu as pltpu


def _gather_rows_kernel(tile_b, n_classes, idx_ref, table_hbm, out_ref, sem):
    """Gather `tile_b` embedding rows from HBM into the (tile_b, D) output block.

    idx_ref   : (B_pad,) int32 scalar-prefetch array in SMEM (class ids).
    table_hbm : (n_classes, D) table left in HBM (pl.ANY) — rows DMA'd on demand.
    out_ref   : (tile_b, D) VMEM output block, filled purely by DMA.
    sem       : (tile_b,) DMA semaphores, one per in-flight row copy.
    """
    base = pl.program_id(0) * tile_b

    # Issue ALL row copies before the first wait so the HBM fetches overlap.
    # tile_b is a small static Python int -> plain unrolled Python loop.
    for b in range(tile_b):
        row = idx_ref[base + b]
        # TODO(synk): PyTorch nn.Embedding raises on out-of-range ids; we clamp
        # so the gather never reads outside the table.
        row = jnp.minimum(jnp.maximum(row, 0), n_classes - 1)
        pltpu.make_async_copy(
            table_hbm.at[pl.ds(row, 1), :],
            out_ref.at[pl.ds(b, 1), :],
            sem.at[b],
        ).start()

    # Wait on all of them (descriptor only needs matching shape/size; the
    # semaphore carries completion of the copy issued above).
    for b in range(tile_b):
        pltpu.make_async_copy(
            table_hbm.at[pl.ds(0, 1), :],
            out_ref.at[pl.ds(b, 1), :],
            sem.at[b],
        ).wait()


def class_embedder_forward(batch, embedding_table, key="class"):
    """JAX/Pallas equivalent of ClassEmbedder.forward(batch, key)."""
    c = batch[key]                                   # (B,) class ids
    idx = jnp.asarray(c, jnp.int32).reshape(-1)      # scalar prefetch must be int32
    B = idx.shape[0]
    n_classes, embed_dim = embedding_table.shape
    itemsize = jnp.dtype(embedding_table.dtype).itemsize

    # Single grid step for small batches; for large ones chunk at 128 rows so
    # the per-step unrolled DMA-issue loop stays modest (v5e-friendly) while
    # still amortizing the ~0.35 us per-step pipeline overhead.
    tile_b = B if B <= 128 else 128
    num_steps = (B + tile_b - 1) // tile_b
    b_pad = num_steps * tile_b
    if b_pad != B:
        idx = jnp.pad(idx, (0, b_pad - B))           # padded rows gather row 0

    kernel = functools.partial(_gather_rows_kernel, tile_b, n_classes)

    grid_spec = pltpu.PrefetchScalarGridSpec(
        num_scalar_prefetch=1,                       # idx lands in SMEM
        grid=(num_steps,),
        in_specs=[
            pl.BlockSpec(memory_space=pl.ANY),       # table stays in HBM
        ],
        out_specs=pl.BlockSpec((tile_b, embed_dim),
                               lambda i, idx_ref: (i, 0)),
        scratch_shapes=[pltpu.SemaphoreType.DMA((tile_b,))],
    )

    out = pl.pallas_call(
        kernel,
        out_shape=jax.ShapeDtypeStruct((b_pad, embed_dim), embedding_table.dtype),
        grid_spec=grid_spec,
        compiler_params=pltpu.CompilerParams(
            # Only engage multi-core splitting when there is >1 chunk of work.
            dimension_semantics=(("parallel",) if num_steps > 1 else ("arbitrary",)),
        ),
        cost_estimate=pl.CostEstimate(
            flops=0,
            transcendentals=0,
            bytes_accessed=2 * B * embed_dim * itemsize,
        ),
    )(idx, embedding_table)

    if b_pad != B:
        out = out[:B]
    # Free reshape outside the kernel: (B, D) -> (B, 1, D), matching
    # nn.Embedding applied to a (B, 1) index tensor.
    return out[:, None, :]


if __name__ == "__main__":
    rng = jax.random.PRNGKey(0)
    k_tab, k_idx = jax.random.split(rng)

    n_classes = 1000      # ClassEmbedder default
    embed_dim = 128       # lane-dense output width
    batch_size = 8

    # Deterministic synthetic parameters: nn.Embedding weight ~ N(0, 1)
    embedding_table = jax.random.normal(
        k_tab, (n_classes, embed_dim), dtype=jnp.float32
    )
    class_ids = jax.random.randint(
        k_idx, (batch_size,), 0, n_classes, dtype=jnp.int32
    )
    batch = {"class": class_ids}

    out = class_embedder_forward(batch, embedding_table)
    out = jax.block_until_ready(out)

    # Reference: plain JAX gather, same semantics as the torch embedding lookup.
    ref = embedding_table[class_ids][:, None, :]
    assert out.shape == (batch_size, 1, embed_dim), out.shape
    assert out.dtype == jnp.float32
    assert jnp.allclose(out, ref), "Pallas embedding lookup mismatch"

    print("KERNEL_OK")
</pallas_src>

<mosaic_0001>
module attributes {stable_mosaic.version = 11 : i64} {
  func.func @_gather_rows_kernel(%arg0: i32, %arg1: memref<8xi32, #tpu.memory_space<smem>>, %arg2: memref<1000x128xf32, #tpu.memory_space<any>>, %arg3: memref<8x128xf32, #tpu.memory_space<vmem>>, %arg4: memref<8x!tpu.dma_semaphore, #tpu.memory_space<semaphore_mem>>) attributes {dimension_semantics = [#tpu.dimension_semantics<arbitrary>], iteration_bounds = array<i64: 1>, scalar_prefetch = 1 : i64, scratch_operands = 1 : i64, tpu.core_type = #tpu.core_type<tc>, window_params = [{}, {transform_indices = @transform_1, window_bounds = array<i64: 8, 128>}]} {
    %c8_i32 = arith.constant 8 : i32
    %0 = arith.muli %arg0, %c8_i32 : i32
    %c0_i32 = arith.constant 0 : i32
    %1 = arith.addi %0, %c0_i32 : i32
    %2 = arith.index_cast %1 : i32 to index
    %3 = memref.load %arg1[%2] : memref<8xi32, #tpu.memory_space<smem>>
    %c0_i32_0 = arith.constant 0 : i32
    %4 = arith.maxsi %3, %c0_i32_0 : i32
    %c999_i32 = arith.constant 999 : i32
    %5 = arith.minsi %4, %c999_i32 : i32
    %c0_i32_1 = arith.constant 0 : i32
    %c0_i32_2 = arith.constant 0 : i32
    %6 = tpu.memref_slice %arg2[%5, %c0_i32_2] : memref<1000x128xf32, #tpu.memory_space<any>> -> memref<1x128xf32, #tpu.memory_space<any>>
    %c0_i32_3 = arith.constant 0 : i32
    %c0_i32_4 = arith.constant 0 : i32
    %7 = tpu.memref_slice %arg3[%c0_i32_3, %c0_i32_4] : memref<8x128xf32, #tpu.memory_space<vmem>> -> memref<1x128xf32, #tpu.memory_space<vmem>>
    %8 = tpu.memref_slice %arg4[%c0_i32_1] : memref<8x!tpu.dma_semaphore, #tpu.memory_space<semaphore_mem>> -> memref<1x!tpu.dma_semaphore, #tpu.memory_space<semaphore_mem>>
    %9 = tpu.memref_squeeze %8 : memref<1x!tpu.dma_semaphore, #tpu.memory_space<semaphore_mem>> -> memref<!tpu.dma_semaphore, #tpu.memory_space<semaphore_mem>>
    tpu.enqueue_dma source(%6 : memref<1x128xf32, #tpu.memory_space<any>>) target(%7 : memref<1x128xf32, #tpu.memory_space<vmem>>) target_semaphore(%9 : memref<!tpu.dma_semaphore, #tpu.memory_space<semaphore_mem>>)
    %c1_i32 = arith.constant 1 : i32
    %10 = arith.addi %0, %c1_i32 : i32
    %11 = arith.index_cast %10 : i32 to index
    %12 = memref.load %arg1[%11] : memref<8xi32, #tpu.memory_space<smem>>
    %c0_i32_5 = arith.constant 0 : i32
    %13 = arith.maxsi %12, %c0_i32_5 : i32
    %c999_i32_6 = arith.constant 999 : i32
    %14 = arith.minsi %13, %c999_i32_6 : i32
    %c1_i32_7 = arith.constant 1 : i32
    %c0_i32_8 = arith.constant 0 : i32
    %15 = tpu.memref_slice %arg2[%14, %c0_i32_8] : memref<1000x128xf32, #tpu.memory_space<any>> -> memref<1x128xf32, #tpu.memory_space<any>>
    %c1_i32_9 = arith.constant 1 : i32
    %c0_i32_10 = arith.constant 0 : i32
    %16 = tpu.memref_slice %arg3[%c1_i32_9, %c0_i32_10] : memref<8x128xf32, #tpu.memory_space<vmem>> -> memref<1x128xf32, #tpu.memory_space<vmem>>
    %17 = tpu.memref_slice %arg4[%c1_i32_7] : memref<8x!tpu.dma_semaphore, #tpu.memory_space<semaphore_mem>> -> memref<1x!tpu.dma_semaphore, #tpu.memory_space<semaphore_mem>>
    %18 = tpu.memref_squeeze %17 : memref<1x!tpu.dma_semaphore, #tpu.memory_space<semaphore_mem>> -> memref<!tpu.dma_semaphore, #tpu.memory_space<semaphore_mem>>
    tpu.enqueue_dma source(%15 : memref<1x128xf32, #tpu.memory_space<any>>) target(%16 : memref<1x128xf32, #tpu.memory_space<vmem>>) target_semaphore(%18 : memref<!tpu.dma_semaphore, #tpu.memory_space<semaphore_mem>>)
    %c2_i32 = arith.constant 2 : i32
    %19 = arith.addi %0, %c2_i32 : i32
    %20 = arith.index_cast %19 : i32 to index
    %21 = memref.load %arg1[%20] : memref<8xi32, #tpu.memory_space<smem>>
    %c0_i32_11 = arith.constant 0 : i32
    %22 = arith.maxsi %21, %c0_i32_11 : i32
    %c999_i32_12 = arith.constant 999 : i32
    %23 = arith.minsi %22, %c999_i32_12 : i32
    %c2_i32_13 = arith.constant 2 : i32
    %c0_i32_14 = arith.constant 0 : i32
    %24 = tpu.memref_slice %arg2[%23, %c0_i32_14] : memref<1000x128xf32, #tpu.memory_space<any>> -> memref<1x128xf32, #tpu.memory_space<any>>
    %c2_i32_15 = arith.constant 2 : i32
    %c0_i32_16 = arith.constant 0 : i32
    %25 = tpu.memref_slice %arg3[%c2_i32_15, %c0_i32_16] : memref<8x128xf32, #tpu.memory_space<vmem>> -> memref<1x128xf32, #tpu.memory_space<vmem>>
    %26 = tpu.memref_slice %arg4[%c2_i32_13] : memref<8x!tpu.dma_semaphore, #tpu.memory_space<semaphore_mem>> -> memref<1x!tpu.dma_semaphore, #tpu.memory_space<semaphore_mem>>
    %27 = tpu.memref_squeeze %26 : memref<1x!tpu.dma_semaphore, #tpu.memory_space<semaphore_mem>> -> memref<!tpu.dma_semaphore, #tpu.memory_space<semaphore_mem>>
    tpu.enqueue_dma source(%24 : memref<1x128xf32, #tpu.memory_space<any>>) target(%25 : memref<1x128xf32, #tpu.memory_space<vmem>>) target_semaphore(%27 : memref<!tpu.dma_semaphore, #tpu.memory_space<semaphore_mem>>)
    %c3_i32 = arith.constant 3 : i32
    %28 = arith.addi %0, %c3_i32 : i32
    %29 = arith.index_cast %28 : i32 to index
    %30 = memref.load %arg1[%29] : memref<8xi32, #tpu.memory_space<smem>>
    %c0_i32_17 = arith.constant 0 : i32
    %31 = arith.maxsi %30, %c0_i32_17 : i32
    %c999_i32_18 = arith.constant 999 : i32
    %32 = arith.minsi %31, %c999_i32_18 : i32
    %c3_i32_19 = arith.constant 3 : i32
    %c0_i32_20 = arith.constant 0 : i32
    %33 = tpu.memref_slice %arg2[%32, %c0_i32_20] : memref<1000x128xf32, #tpu.memory_space<any>> -> memref<1x128xf32, #tpu.memory_space<any>>
    %c3_i32_21 = arith.constant 3 : i32
    %c0_i32_22 = arith.constant 0 : i32
    %34 = tpu.memref_slice %arg3[%c3_i32_21, %c0_i32_22] : memref<8x128xf32, #tpu.memory_space<vmem>> -> memref<1x128xf32, #tpu.memory_space<vmem>>
    %35 = tpu.memref_slice %arg4[%c3_i32_19] : memref<8x!tpu.dma_semaphore, #tpu.memory_space<semaphore_mem>> -> memref<1x!tpu.dma_semaphore, #tpu.memory_space<semaphore_mem>>
    %36 = tpu.memref_squeeze %35 : memref<1x!tpu.dma_semaphore, #tpu.memory_space<semaphore_mem>> -> memref<!tpu.dma_semaphore, #tpu.memory_space<semaphore_mem>>
    tpu.enqueue_dma source(%33 : memref<1x128xf32, #tpu.memory_space<any>>) target(%34 : memref<1x128xf32, #tpu.memory_space<vmem>>) target_semaphore(%36 : memref<!tpu.dma_semaphore, #tpu.memory_space<semaphore_mem>>)
    %c4_i32 = arith.constant 4 : i32
    %37 = arith.addi %0, %c4_i32 : i32
    %38 = arith.index_cast %37 : i32 to index
    %39 = memref.load %arg1[%38] : memref<8xi32, #tpu.memory_space<smem>>
    %c0_i32_23 = arith.constant 0 : i32
    %40 = arith.maxsi %39, %c0_i32_23 : i32
    %c999_i32_24 = arith.constant 999 : i32
    %41 = arith.minsi %40, %c999_i32_24 : i32
    %c4_i32_25 = arith.constant 4 : i32
    %c0_i32_26 = arith.constant 0 : i32
    %42 = tpu.memref_slice %arg2[%41, %c0_i32_26] : memref<1000x128xf32, #tpu.memory_space<any>> -> memref<1x128xf32, #tpu.memory_space<any>>
    %c4_i32_27 = arith.constant 4 : i32
    %c0_i32_28 = arith.constant 0 : i32
    %43 = tpu.memref_slice %arg3[%c4_i32_27, %c0_i32_28] : memref<8x128xf32, #tpu.memory_space<vmem>> -> memref<1x128xf32, #tpu.memory_space<vmem>>
    %44 = tpu.memref_slice %arg4[%c4_i32_25] : memref<8x!tpu.dma_semaphore, #tpu.memory_space<semaphore_mem>> -> memref<1x!tpu.dma_semaphore, #tpu.memory_space<semaphore_mem>>
    %45 = tpu.memref_squeeze %44 : memref<1x!tpu.dma_semaphore, #tpu.memory_space<semaphore_mem>> -> memref<!tpu.dma_semaphore, #tpu.memory_space<semaphore_mem>>
    tpu.enqueue_dma source(%42 : memref<1x128xf32, #tpu.memory_space<any>>) target(%43 : memref<1x128xf32, #tpu.memory_space<vmem>>) target_semaphore(%45 : memref<!tpu.dma_semaphore, #tpu.memory_space<semaphore_mem>>)
    %c5_i32 = arith.constant 5 : i32
    %46 = arith.addi %0, %c5_i32 : i32
    %47 = arith.index_cast %46 : i32 to index
    %48 = memref.load %arg1[%47] : memref<8xi32, #tpu.memory_space<smem>>
    %c0_i32_29 = arith.constant 0 : i32
    %49 = arith.maxsi %48, %c0_i32_29 : i32
    %c999_i32_30 = arith.constant 999 : i32
    %50 = arith.minsi %49, %c999_i32_30 : i32
    %c5_i32_31 = arith.constant 5 : i32
    %c0_i32_32 = arith.constant 0 : i32
    %51 = tpu.memref_slice %arg2[%50, %c0_i32_32] : memref<1000x128xf32, #tpu.memory_space<any>> -> memref<1x128xf32, #tpu.memory_space<any>>
    %c5_i32_33 = arith.constant 5 : i32
    %c0_i32_34 = arith.constant 0 : i32
    %52 = tpu.memref_slice %arg3[%c5_i32_33, %c0_i32_34] : memref<8x128xf32, #tpu.memory_space<vmem>> -> memref<1x128xf32, #tpu.memory_space<vmem>>
    %53 = tpu.memref_slice %arg4[%c5_i32_31] : memref<8x!tpu.dma_semaphore, #tpu.memory_space<semaphore_mem>> -> memref<1x!tpu.dma_semaphore, #tpu.memory_space<semaphore_mem>>
    %54 = tpu.memref_squeeze %53 : memref<1x!tpu.dma_semaphore, #tpu.memory_space<semaphore_mem>> -> memref<!tpu.dma_semaphore, #tpu.memory_space<semaphore_mem>>
    tpu.enqueue_dma source(%51 : memref<1x128xf32, #tpu.memory_space<any>>) target(%52 : memref<1x128xf32, #tpu.memory_space<vmem>>) target_semaphore(%54 : memref<!tpu.dma_semaphore, #tpu.memory_space<semaphore_mem>>)
    %c6_i32 = arith.constant 6 : i32
    %55 = arith.addi %0, %c6_i32 : i32
    %56 = arith.index_cast %55 : i32 to index
    %57 = memref.load %arg1[%56] : memref<8xi32, #tpu.memory_space<smem>>
    %c0_i32_35 = arith.constant 0 : i32
    %58 = arith.maxsi %57, %c0_i32_35 : i32
    %c999_i32_36 = arith.constant 999 : i32
    %59 = arith.minsi %58, %c999_i32_36 : i32
    %c6_i32_37 = arith.constant 6 : i32
    %c0_i32_38 = arith.constant 0 : i32
    %60 = tpu.memref_slice %arg2[%59, %c0_i32_38] : memref<1000x128xf32, #tpu.memory_space<any>> -> memref<1x128xf32, #tpu.memory_space<any>>
    %c6_i32_39 = arith.constant 6 : i32
    %c0_i32_40 = arith.constant 0 : i32
    %61 = tpu.memref_slice %arg3[%c6_i32_39, %c0_i32_40] : memref<8x128xf32, #tpu.memory_space<vmem>> -> memref<1x128xf32, #tpu.memory_space<vmem>>
    %62 = tpu.memref_slice %arg4[%c6_i32_37] : memref<8x!tpu.dma_semaphore, #tpu.memory_space<semaphore_mem>> -> memref<1x!tpu.dma_semaphore, #tpu.memory_space<semaphore_mem>>
    %63 = tpu.memref_squeeze %62 : memref<1x!tpu.dma_semaphore, #tpu.memory_space<semaphore_mem>> -> memref<!tpu.dma_semaphore, #tpu.memory_space<semaphore_mem>>
    tpu.enqueue_dma source(%60 : memref<1x128xf32, #tpu.memory_space<any>>) target(%61 : memref<1x128xf32, #tpu.memory_space<vmem>>) target_semaphore(%63 : memref<!tpu.dma_semaphore, #tpu.memory_space<semaphore_mem>>)
    %c7_i32 = arith.constant 7 : i32
    %64 = arith.addi %0, %c7_i32 : i32
    %65 = arith.index_cast %64 : i32 to index
    %66 = memref.load %arg1[%65] : memref<8xi32, #tpu.memory_space<smem>>
    %c0_i32_41 = arith.constant 0 : i32
    %67 = arith.maxsi %66, %c0_i32_41 : i32
    %c999_i32_42 = arith.constant 999 : i32
    %68 = arith.minsi %67, %c999_i32_42 : i32
    %c7_i32_43 = arith.constant 7 : i32
    %c0_i32_44 = arith.constant 0 : i32
    %69 = tpu.memref_slice %arg2[%68, %c0_i32_44] : memref<1000x128xf32, #tpu.memory_space<any>> -> memref<1x128xf32, #tpu.memory_space<any>>
    %c7_i32_45 = arith.constant 7 : i32
    %c0_i32_46 = arith.constant 0 : i32
    %70 = tpu.memref_slice %arg3[%c7_i32_45, %c0_i32_46] : memref<8x128xf32, #tpu.memory_space<vmem>> -> memref<1x128xf32, #tpu.memory_space<vmem>>
    %71 = tpu.memref_slice %arg4[%c7_i32_43] : memref<8x!tpu.dma_semaphore, #tpu.memory_space<semaphore_mem>> -> memref<1x!tpu.dma_semaphore, #tpu.memory_space<semaphore_mem>>
    %72 = tpu.memref_squeeze %71 : memref<1x!tpu.dma_semaphore, #tpu.memory_space<semaphore_mem>> -> memref<!tpu.dma_semaphore, #tpu.memory_space<semaphore_mem>>
    tpu.enqueue_dma source(%69 : memref<1x128xf32, #tpu.memory_space<any>>) target(%70 : memref<1x128xf32, #tpu.memory_space<vmem>>) target_semaphore(%72 : memref<!tpu.dma_semaphore, #tpu.memory_space<semaphore_mem>>)
    %c0_i32_47 = arith.constant 0 : i32
    %c0_i32_48 = arith.constant 0 : i32
    %c0_i32_49 = arith.constant 0 : i32
    %73 = tpu.memref_slice %arg2[%c0_i32_48, %c0_i32_49] : memref<1000x128xf32, #tpu.memory_space<any>> -> memref<1x128xf32, #tpu.memory_space<any>>
    %c0_i32_50 = arith.constant 0 : i32
    %c0_i32_51 = arith.constant 0 : i32
    %74 = tpu.memref_slice %arg3[%c0_i32_50, %c0_i32_51] : memref<8x128xf32, #tpu.memory_space<vmem>> -> memref<1x128xf32, #tpu.memory_space<vmem>>
    %75 = tpu.memref_slice %arg4[%c0_i32_47] : memref<8x!tpu.dma_semaphore, #tpu.memory_space<semaphore_mem>> -> memref<1x!tpu.dma_semaphore, #tpu.memory_space<semaphore_mem>>
    %76 = tpu.memref_squeeze %75 : memref<1x!tpu.dma_semaphore, #tpu.memory_space<semaphore_mem>> -> memref<!tpu.dma_semaphore, #tpu.memory_space<semaphore_mem>>
    tpu.wait_dma2 semaphore(%76 : memref<!tpu.dma_semaphore, #tpu.memory_space<semaphore_mem>>) src(%73 : memref<1x128xf32, #tpu.memory_space<any>>) dst(%74 : memref<1x128xf32, #tpu.memory_space<vmem>>)
    %c1_i32_52 = arith.constant 1 : i32
    %c0_i32_53 = arith.constant 0 : i32
    %c0_i32_54 = arith.constant 0 : i32
    %77 = tpu.memref_slice %arg2[%c0_i32_53, %c0_i32_54] : memref<1000x128xf32, #tpu.memory_space<any>> -> memref<1x128xf32, #tpu.memory_space<any>>
    %c1_i32_55 = arith.constant 1 : i32
    %c0_i32_56 = arith.constant 0 : i32
    %78 = tpu.memref_slice %arg3[%c1_i32_55, %c0_i32_56] : memref<8x128xf32, #tpu.memory_space<vmem>> -> memref<1x128xf32, #tpu.memory_space<vmem>>
    %79 = tpu.memref_slice %arg4[%c1_i32_52] : memref<8x!tpu.dma_semaphore, #tpu.memory_space<semaphore_mem>> -> memref<1x!tpu.dma_semaphore, #tpu.memory_space<semaphore_mem>>
    %80 = tpu.memref_squeeze %79 : memref<1x!tpu.dma_semaphore, #tpu.memory_space<semaphore_mem>> -> memref<!tpu.dma_semaphore, #tpu.memory_space<semaphore_mem>>
    tpu.wait_dma2 semaphore(%80 : memref<!tpu.dma_semaphore, #tpu.memory_space<semaphore_mem>>) src(%77 : memref<1x128xf32, #tpu.memory_space<any>>) dst(%78 : memref<1x128xf32, #tpu.memory_space<vmem>>)
    %c2_i32_57 = arith.constant 2 : i32
    %c0_i32_58 = arith.constant 0 : i32
    %c0_i32_59 = arith.constant 0 : i32
    %81 = tpu.memref_slice %arg2[%c0_i32_58, %c0_i32_59] : memref<1000x128xf32, #tpu.memory_space<any>> -> memref<1x128xf32, #tpu.memory_space<any>>
    %c2_i32_60 = arith.constant 2 : i32
    %c0_i32_61 = arith.constant 0 : i32
    %82 = tpu.memref_slice %arg3[%c2_i32_60, %c0_i32_61] : memref<8x128xf32, #tpu.memory_space<vmem>> -> memref<1x128xf32, #tpu.memory_space<vmem>>
    %83 = tpu.memref_slice %arg4[%c2_i32_57] : memref<8x!tpu.dma_semaphore, #tpu.memory_space<semaphore_mem>> -> memref<1x!tpu.dma_semaphore, #tpu.memory_space<semaphore_mem>>
    %84 = tpu.memref_squeeze %83 : memref<1x!tpu.dma_semaphore, #tpu.memory_space<semaphore_mem>> -> memref<!tpu.dma_semaphore, #tpu.memory_space<semaphore_mem>>
    tpu.wait_dma2 semaphore(%84 : memref<!tpu.dma_semaphore, #tpu.memory_space<semaphore_mem>>) src(%81 : memref<1x128xf32, #tpu.memory_space<any>>) dst(%82 : memref<1x128xf32, #tpu.memory_space<vmem>>)
    %c3_i32_62 = arith.constant 3 : i32
    %c0_i32_63 = arith.constant 0 : i32
    %c0_i32_64 = arith.constant 0 : i32
    %85 = tpu.memref_slice %arg2[%c0_i32_63, %c0_i32_64] : memref<1000x128xf32, #tpu.memory_space<any>> -> memref<1x128xf32, #tpu.memory_space<any>>
    %c3_i32_65 = arith.constant 3 : i32
    %c0_i32_66 = arith.constant 0 : i32
    %86 = tpu.memref_slice %arg3[%c3_i32_65, %c0_i32_66] : memref<8x128xf32, #tpu.memory_space<vmem>> -> memref<1x128xf32, #tpu.memory_space<vmem>>
    %87 = tpu.memref_slice %arg4[%c3_i32_62] : memref<8x!tpu.dma_semaphore, #tpu.memory_space<semaphore_mem>> -> memref<1x!tpu.dma_semaphore, #tpu.memory_space<semaphore_mem>>
    %88 = tpu.memref_squeeze %87 : memref<1x!tpu.dma_semaphore, #tpu.memory_space<semaphore_mem>> -> memref<!tpu.dma_semaphore, #tpu.memory_space<semaphore_mem>>
    tpu.wait_dma2 semaphore(%88 : memref<!tpu.dma_semaphore, #tpu.memory_space<semaphore_mem>>) src(%85 : memref<1x128xf32, #tpu.memory_space<any>>) dst(%86 : memref<1x128xf32, #tpu.memory_space<vmem>>)
    %c4_i32_67 = arith.constant 4 : i32
    %c0_i32_68 = arith.constant 0 : i32
    %c0_i32_69 = arith.constant 0 : i32
    %89 = tpu.memref_slice %arg2[%c0_i32_68, %c0_i32_69] : memref<1000x128xf32, #tpu.memory_space<any>> -> memref<1x128xf32, #tpu.memory_space<any>>
    %c4_i32_70 = arith.constant 4 : i32
    %c0_i32_71 = arith.constant 0 : i32
    %90 = tpu.memref_slice %arg3[%c4_i32_70, %c0_i32_71] : memref<8x128xf32, #tpu.memory_space<vmem>> -> memref<1x128xf32, #tpu.memory_space<vmem>>
    %91 = tpu.memref_slice %arg4[%c4_i32_67] : memref<8x!tpu.dma_semaphore, #tpu.memory_space<semaphore_mem>> -> memref<1x!tpu.dma_semaphore, #tpu.memory_space<semaphore_mem>>
    %92 = tpu.memref_squeeze %91 : memref<1x!tpu.dma_semaphore, #tpu.memory_space<semaphore_mem>> -> memref<!tpu.dma_semaphore, #tpu.memory_space<semaphore_mem>>
    tpu.wait_dma2 semaphore(%92 : memref<!tpu.dma_semaphore, #tpu.memory_space<semaphore_mem>>) src(%89 : memref<1x128xf32, #tpu.memory_space<any>>) dst(%90 : memref<1x128xf32, #tpu.memory_space<vmem>>)
    %c5_i32_72 = arith.constant 5 : i32
    %c0_i32_73 = arith.constant 0 : i32
    %c0_i32_74 = arith.constant 0 : i32
    %93 = tpu.memref_slice %arg2[%c0_i32_73, %c0_i32_74] : memref<1000x128xf32, #tpu.memory_space<any>> -> memref<1x128xf32, #tpu.memory_space<any>>
    %c5_i32_75 = arith.constant 5 : i32
    %c0_i32_76 = arith.constant 0 : i32
    %94 = tpu.memref_slice %arg3[%c5_i32_75, %c0_i32_76] : memref<8x128xf32, #tpu.memory_space<vmem>> -> memref<1x128xf32, #tpu.memory_space<vmem>>
    %95 = tpu.memref_slice %arg4[%c5_i32_72] : memref<8x!tpu.dma_semaphore, #tpu.memory_space<semaphore_mem>> -> memref<1x!tpu.dma_semaphore, #tpu.memory_space<semaphore_mem>>
    %96 = tpu.memref_squeeze %95 : memref<1x!tpu.dma_semaphore, #tpu.memory_space<semaphore_mem>> -> memref<!tpu.dma_semaphore, #tpu.memory_space<semaphore_mem>>
    tpu.wait_dma2 semaphore(%96 : memref<!tpu.dma_semaphore, #tpu.memory_space<semaphore_mem>>) src(%93 : memref<1x128xf32, #tpu.memory_space<any>>) dst(%94 : memref<1x128xf32, #tpu.memory_space<vmem>>)
    %c6_i32_77 = arith.constant 6 : i32
    %c0_i32_78 = arith.constant 0 : i32
    %c0_i32_79 = arith.constant 0 : i32
    %97 = tpu.memref_slice %arg2[%c0_i32_78, %c0_i32_79] : memref<1000x128xf32, #tpu.memory_space<any>> -> memref<1x128xf32, #tpu.memory_space<any>>
    %c6_i32_80 = arith.constant 6 : i32
    %c0_i32_81 = arith.constant 0 : i32
    %98 = tpu.memref_slice %arg3[%c6_i32_80, %c0_i32_81] : memref<8x128xf32, #tpu.memory_space<vmem>> -> memref<1x128xf32, #tpu.memory_space<vmem>>
    %99 = tpu.memref_slice %arg4[%c6_i32_77] : memref<8x!tpu.dma_semaphore, #tpu.memory_space<semaphore_mem>> -> memref<1x!tpu.dma_semaphore, #tpu.memory_space<semaphore_mem>>
    %100 = tpu.memref_squeeze %99 : memref<1x!tpu.dma_semaphore, #tpu.memory_space<semaphore_mem>> -> memref<!tpu.dma_semaphore, #tpu.memory_space<semaphore_mem>>
    tpu.wait_dma2 semaphore(%100 : memref<!tpu.dma_semaphore, #tpu.memory_space<semaphore_mem>>) src(%97 : memref<1x128xf32, #tpu.memory_space<any>>) dst(%98 : memref<1x128xf32, #tpu.memory_space<vmem>>)
    %c7_i32_82 = arith.constant 7 : i32
    %c0_i32_83 = arith.constant 0 : i32
    %c0_i32_84 = arith.constant 0 : i32
    %101 = tpu.memref_slice %arg2[%c0_i32_83, %c0_i32_84] : memref<1000x128xf32, #tpu.memory_space<any>> -> memref<1x128xf32, #tpu.memory_space<any>>
    %c7_i32_85 = arith.constant 7 : i32
    %c0_i32_86 = arith.constant 0 : i32
    %102 = tpu.memref_slice %arg3[%c7_i32_85, %c0_i32_86] : memref<8x128xf32, #tpu.memory_space<vmem>> -> memref<1x128xf32, #tpu.memory_space<vmem>>
    %103 = tpu.memref_slice %arg4[%c7_i32_82] : memref<8x!tpu.dma_semaphore, #tpu.memory_space<semaphore_mem>> -> memref<1x!tpu.dma_semaphore, #tpu.memory_space<semaphore_mem>>
    %104 = tpu.memref_squeeze %103 : memref<1x!tpu.dma_semaphore, #tpu.memory_space<semaphore_mem>> -> memref<!tpu.dma_semaphore, #tpu.memory_space<semaphore_mem>>
    tpu.wait_dma2 semaphore(%104 : memref<!tpu.dma_semaphore, #tpu.memory_space<semaphore_mem>>) src(%101 : memref<1x128xf32, #tpu.memory_space<any>>) dst(%102 : memref<1x128xf32, #tpu.memory_space<vmem>>)
    return
  }
  func.func @transform_1(%arg0: i32, %arg1: memref<8xi32, #tpu.memory_space<smem>>) -> (i32, i32) {
    %c0_i32 = arith.constant 0 : i32
    %c0_i32_0 = arith.constant 0 : i32
    return %arg0, %c0_i32 : i32, i32
  }
}

</mosaic_0001>

<bundles_post_ra>
// kernel: tpu_custom_call.1
= control target key start
LH: loop header
LB: loop body
LE: loop exit
PB: predicated region body
PF: predicated region fallthrough
CT: control target
= control target key end

     0   :  { %s592_s9 = smov [#allocation4]   ;;  %s774_s0 = inlined_call_operand.hbm [shape: s32[8], index: 0, kind: input, shape index: {}]   ;;  %s775_s1 = inlined_call_operand.hbm [shape: f32[1000,128], index: 1, kind: input, shape index: {}]   ;;  %s776_s2 = inlined_call_operand.hbm [shape: f32[8,128], index: 2, kind: output, shape index: {}]  }
   0x1   :  { %8 = dma.hbm_to_smem %s774_s0, 16, %s592_s9, [#allocation3] }
   0x2   :  { %572 = dma.done.wait [#allocation3], 16 }
   0x3   :  { %573 = vsyncadd [#allocation3], 4294967280 }
   0x4   :  { %10 = sfence }
   0x5   :  { %11 = vsyncpa [#allocation6], 0  ;;  %s13_s12 = sld [smem:[#allocation4]]  ;;  %s593_s13 = smov [#allocation5]  }
   0x6   :  { %s27_s14 = sshll.u32 %s593_s13, 4  ;;  %s286_s15 = sld [smem:[#allocation4 + $0x1]]  ;;  %s619_s14 = int_to_ptr.vmem [resolvable:$true] %s27_s14 }
   0x7   :  { %s594_s16 = smov [#allocation5 + $0x1]   ;;  %s621_s18 = sld [smem:[#allocation4 + $0x2]] }
   0x8   :  { %s48_s17 = sshll.u32 %s594_s16, 4  ;;  %s595_s19 = smov [#allocation5 + $0x2]   ;;  %s623_s17 = int_to_ptr.vmem [resolvable:$true] %s48_s17 }
   0x9   :  { %s625_s20 = sshll.u32 %s595_s19, 4  ;;  %s627_s0 = sld [smem:[#allocation4 + $0x3]]  ;;  %s70_s20 = int_to_ptr.vmem [resolvable:$true] %s625_s20 }
   0xa   :  { %s636_s29 = scalar_lea.hbm %s775_s1, 16000 }
   0xb   :  { %p14_p0 = scmp.gt.s32.totalorder %s13_s12, 0  ;;  %p280_p1 = scmp.lt.s32.totalorder %s13_s12, 999 }
   0xc   :  { %p33_p2 = scmp.gt.s32.totalorder %s286_s15, 0  ;;  %p287_p3 = scmp.lt.s32.totalorder %s286_s15, 999 }
   0xd   :  { %s778_s12 = smov (!%p14_p0, %s13_s12), 0  ;;  %p54_p4 = scmp.gt.s32.totalorder %s621_s18, 0 }
   0xe   :  { %s780_s15 = smov (!%p33_p2, %s286_s15), 0  ;;  %s782_s12 = smov (!%p280_p1, %s778_s12), 999 }
   0xf   :  { %s784_s15 = smov (!%p287_p3, %s780_s15), 999  ;;  %s285_s21 = sshll.u32 %s782_s12, 4 }
  0x10   :  { %s19_s24 = scalar_lea.hbm %s775_s1, %s285_s21  ;;  %s292_s25 = sshll.u32 %s784_s15, 4 }
  0x11   :  { %s376_s26 = scalar_lea.hbm %s19_s24, 16  ;;  %p379_p6 = scmp.lt.s32.totalorder %s19_s24, %s775_s1 }
  0x12   :  { %p377_p5 = scmp.ne.s32.totalorder %s19_s24, %s376_s26  ;;  %p380_p7 = scmp.lt.s32.totalorder %s636_s29, %s376_s26 }
  0x14   :  { %p381_p8 = por %p380_p7, %p379_p6 }
  0x16   :  { %p382_p9 = pnand %p381_p8, %p377_p5 }
  0x18   :  { %385 = shalt.err (!%p382_p9)  }
  0x19   :  { %s386_s4 = scalar_lea.vmem %s619_s14, 16  ;;  %s645_s5 = scalar_lea.vmem %s619_s14, 128 }
  0x1a   :  { %p387_p10 = scmp.ne.s32.totalorder %s619_s14, %s386_s4  ;;  %p391_p11 = scmp.lt.s32.totalorder %s619_s14, %s619_s14 }
  0x1b   :  { %p392_p12 = scmp.lt.s32.totalorder %s645_s5, %s386_s4 }
  0x1d   :  { %p393_p13 = por %p392_p12, %p391_p11 }
  0x1f   :  { %p394_p0 = pnand %p393_p13, %p387_p10 }
  0x21   :  { %397 = shalt.err (!%p394_p0)  }
  0x22   :  { %30 = dma.hbm_to_vmem [thread:$0]  %s19_s24, 16, %s619_s14, [#allocation2] }
  0x23   :  { %s38_s8 = scalar_lea.hbm %s775_s1, %s292_s25  ;;  %p294_p1 = scmp.lt.s32.totalorder %s621_s18, 999 }
  0x24   :  { %s398_s9 = scalar_lea.hbm %s38_s8, 16  ;;  %p401_p3 = scmp.lt.s32.totalorder %s38_s8, %s775_s1 }
  0x25   :  { %p399_p2 = scmp.ne.s32.totalorder %s38_s8, %s398_s9  ;;  %p402_p5 = scmp.lt.s32.totalorder %s636_s29, %s398_s9 }
  0x27   :  { %p403_p6 = por %p402_p5, %p401_p3 }
  0x29   :  { %p404_p7 = pnand %p403_p6, %p399_p2 }
  0x2b   :  { %407 = shalt.err (!%p404_p7)  }
  0x2c   :  { %s408_s12 = scalar_lea.vmem %s623_s17, 16  ;;  %p413_p9 = scmp.lt.s32.totalorder %s623_s17, %s619_s14 }
  0x2d   :  { %p409_p8 = scmp.ne.s32.totalorder %s623_s17, %s408_s12  ;;  %p414_p10 = scmp.lt.s32.totalorder %s645_s5, %s408_s12 }
  0x2f   :  { %p415_p12 = por %p414_p10, %p413_p9 }
  0x31   :  { %p416_p13 = pnand %p415_p12, %p409_p8 }
  0x33   :  { %419 = shalt.err (!%p416_p13)  }
  0x34   :  { %51 = dma.hbm_to_vmem [thread:$0]  %s38_s8, 16, %s623_s17, [#allocation2 + $0x1] }
  0x35   :  { %s55_s13 = scalar_select %p54_p4, %s621_s18, 0 }
  0x36   :  { %p75_p0 = scmp.gt.s32.totalorder %s627_s0, 0  ;;  %p301_p2 = scmp.lt.s32.totalorder %s627_s0, 999 }
  0x37   :  { %s786_s13 = smov (!%p294_p1, %s55_s13), 999 }
  0x38   :  { %s76_s15 = scalar_select %p75_p0, %s627_s0, 0 }
  0x39   :  { %s299_s16 = sshll.u32 %s786_s13, 4 }
  0x3a   :  { %s59_s22 = scalar_lea.hbm %s775_s1, %s299_s16 }
  0x3b   :  { %s420_s23 = scalar_lea.hbm %s59_s22, 16  ;;  %p423_p5 = scmp.lt.s32.totalorder %s59_s22, %s775_s1 }
  0x3c   :  { %p421_p3 = scmp.ne.s32.totalorder %s59_s22, %s420_s23  ;;  %p424_p6 = scmp.lt.s32.totalorder %s636_s29, %s420_s23 }
  0x3e   :  { %p425_p7 = por %p424_p6, %p423_p5 }
  0x40   :  { %p426_p4 = pnand %p425_p7, %p421_p3 }
  0x42   :  { %429 = shalt.err (!%p426_p4)  }
  0x43   :  { %s430_s17 = scalar_lea.vmem %s70_s20, 16  ;;  %p435_p8 = scmp.lt.s32.totalorder %s70_s20, %s619_s14 }
  0x44   :  { %p431_p1 = scmp.ne.s32.totalorder %s70_s20, %s430_s17  ;;  %p436_p9 = scmp.lt.s32.totalorder %s645_s5, %s430_s17 }
  0x46   :  { %p437_p10 = por %p436_p9, %p435_p8 }
  0x48   :  { %p438_p12 = pnand %p437_p10, %p431_p1 }
  0x4a   :  { %441 = shalt.err (!%p438_p12)  }
  0x4b   :  { %72 = dma.hbm_to_vmem [thread:$0]  %s59_s22, 16, %s70_s20, [#allocation2 + $0x2] }
  0x4c   :  { %s788_s15 = smov (!%p301_p2, %s76_s15), 999  ;;  %s596_s18 = smov [#allocation5 + $0x3]  }
  0x4d   :  { %s90_s26 = sshll.u32 %s596_s18, 4  ;;  %s688_s27 = sld [smem:[#allocation4 + $0x4]]  ;;  %s91_s26 = int_to_ptr.vmem [resolvable:$true] %s90_s26 }
  0x4e   :  { %s306_s28 = sshll.u32 %s788_s15, 4 }
  0x4f   :  { %s80_s4 = scalar_lea.hbm %s775_s1, %s306_s28 }
  0x50   :  { %s442_s6 = scalar_lea.hbm %s80_s4, 16  ;;  %p445_p0 = scmp.lt.s32.totalorder %s80_s4, %s775_s1 }
  0x51   :  { %p443_p13 = scmp.ne.s32.totalorder %s80_s4, %s442_s6  ;;  %p446_p3 = scmp.lt.s32.totalorder %s636_s29, %s442_s6 }
  0x53   :  { %p447_p5 = por %p446_p3, %p445_p0 }
  0x55   :  { %p448_p6 = pnand %p447_p5, %p443_p13 }
  0x57   :  { %451 = shalt.err (!%p448_p6)  }
  0x58   :  { %s452_s20 = scalar_lea.vmem %s91_s26, 16  ;;  %p457_p7 = scmp.lt.s32.totalorder %s91_s26, %s619_s14 }
  0x59   :  { %p453_p2 = scmp.ne.s32.totalorder %s91_s26, %s452_s20  ;;  %p458_p4 = scmp.lt.s32.totalorder %s645_s5, %s452_s20 }
  0x5b   :  { %p459_p1 = por %p458_p4, %p457_p7 }
  0x5d   :  { %p460_p8 = pnand %p459_p1, %p453_p2 }
  0x5f   :  { %463 = shalt.err (!%p460_p8)  }
  0x60   :  { %93 = dma.hbm_to_vmem [thread:$0]  %s80_s4, 16, %s91_s26, [#allocation2 + $0x3] }
  0x61   :  { %s699_s0 = sld [smem:[#allocation4 + $0x5]]  ;;  %s597_s9 = smov [#allocation5 + $0x4]  }
  0x62   :  { %s111_s10 = sshll.u32 %s597_s9, 4  ;;  %p96_p9 = scmp.gt.s32.totalorder %s688_s27, 0  ;;  %s112_s10 = int_to_ptr.vmem [resolvable:$true] %s111_s10 }
  0x63   :  { %p308_p10 = scmp.lt.s32.totalorder %s688_s27, 999  ;;  %s703_s11 = sld [smem:[#allocation4 + $0x6]] }
  0x64   :  { %s790_s27 = smov (!%p96_p9, %s688_s27), 0  ;;  %s598_s12 = smov [#allocation5 + $0x5]  }
  0x65   :  { %s132_s13 = sshll.u32 %s598_s12, 4  ;;  %s792_s27 = smov (!%p308_p10, %s790_s27), 999  ;;  %s133_s13 = int_to_ptr.vmem [resolvable:$true] %s132_s13 }
  0x66   :  { %s313_s15 = sshll.u32 %s792_s27, 4 }
  0x67   :  { %p117_p12 = scmp.gt.s32.totalorder %s699_s0, 0  ;;  %p315_p13 = scmp.lt.s32.totalorder %s699_s0, 999 }
  0x68   :  { %s101_s21 = scalar_lea.hbm %s775_s1, %s313_s15 }
  0x69   :  { %p138_p0 = scmp.gt.s32.totalorder %s703_s11, 0  ;;  %s464_s22 = scalar_lea.hbm %s101_s21, 16 }
  0x6a   :  { %p465_p3 = scmp.ne.s32.totalorder %s101_s21, %s464_s22  ;;  %p467_p5 = scmp.lt.s32.totalorder %s101_s21, %s775_s1 }
  0x6b   :  { %p468_p6 = scmp.lt.s32.totalorder %s636_s29, %s464_s22 }
  0x6d   :  { %p469_p2 = por %p468_p6, %p467_p5 }
  0x6f   :  { %p470_p7 = pnand %p469_p2, %p465_p3 }
  0x71   :  { %473 = shalt.err (!%p470_p7)  }
  0x72   :  { %s474_s25 = scalar_lea.vmem %s112_s10, 16  ;;  %p479_p1 = scmp.lt.s32.totalorder %s112_s10, %s619_s14 }
  0x73   :  { %p475_p4 = scmp.ne.s32.totalorder %s112_s10, %s474_s25  ;;  %p480_p8 = scmp.lt.s32.totalorder %s645_s5, %s474_s25 }
  0x75   :  { %p481_p9 = por %p480_p8, %p479_p1 }
  0x77   :  { %p482_p10 = pnand %p481_p9, %p475_p4 }
  0x79   :  { %485 = shalt.err (!%p482_p10)  }
  0x7a   :  { %114 = dma.hbm_to_vmem [thread:$0]  %s101_s21, 16, %s112_s10, [#allocation2 + $0x4] }
  0x7b   :  { %s118_s17 = scalar_select %p117_p12, %s699_s0, 0 }
  0x7c   :  { %s139_s18 = scalar_select %p138_p0, %s703_s11, 0 }
  0x7d   :  { %s794_s17 = smov (!%p315_p13, %s118_s17), 999  ;;  %p322_p3 = scmp.lt.s32.totalorder %s703_s11, 999 }
  0x7e   :  { %s320_s26 = sshll.u32 %s794_s17, 4  ;;  %s727_s27 = sld [smem:[#allocation4 + $0x7]] }
  0x7f   :  { %s122_s3 = scalar_lea.hbm %s775_s1, %s320_s26  ;;  %s599_s4 = smov [#allocation5 + $0x6]  }
  0x80   :  { %s153_s6 = sshll.u32 %s599_s4, 4  ;;  %s486_s7 = scalar_lea.hbm %s122_s3, 16  ;;  %s154_s6 = int_to_ptr.vmem [resolvable:$true] %s153_s6 }
  0x81   :  { %p487_p5 = scmp.ne.s32.totalorder %s122_s3, %s486_s7  ;;  %p489_p12 = scmp.lt.s32.totalorder %s122_s3, %s775_s1 }
  0x82   :  { %p490_p0 = scmp.lt.s32.totalorder %s636_s29, %s486_s7 }
  0x84   :  { %p491_p6 = por %p490_p0, %p489_p12 }
  0x86   :  { %p492_p13 = pnand %p491_p6, %p487_p5 }
  0x88   :  { %495 = shalt.err (!%p492_p13)  }
  0x89   :  { %s496_s0 = scalar_lea.vmem %s133_s13, 16  ;;  %p501_p7 = scmp.lt.s32.totalorder %s133_s13, %s619_s14 }
  0x8a   :  { %p497_p2 = scmp.ne.s32.totalorder %s133_s13, %s496_s0  ;;  %p502_p4 = scmp.lt.s32.totalorder %s645_s5, %s496_s0 }
  0x8c   :  { %p503_p1 = por %p502_p4, %p501_p7 }
  0x8e   :  { %p504_p8 = pnand %p503_p1, %p497_p2 }
  0x90   :  { %507 = shalt.err (!%p504_p8)  }
  0x91   :  { %135 = dma.hbm_to_vmem [thread:$0]  %s122_s3, 16, %s133_s13, [#allocation2 + $0x5] }
  0x92   :  { %s796_s18 = smov (!%p322_p3, %s139_s18), 999  ;;  %p159_p9 = scmp.gt.s32.totalorder %s727_s27, 0 }
  0x93   :  { %s327_s9 = sshll.u32 %s796_s18, 4 }
  0x94   :  { %s143_s15 = scalar_lea.hbm %s775_s1, %s327_s9 }
  0x95   :  { %s508_s16 = scalar_lea.hbm %s143_s15, 16  ;;  %p511_p5 = scmp.lt.s32.totalorder %s143_s15, %s775_s1 }
  0x96   :  { %p509_p10 = scmp.ne.s32.totalorder %s143_s15, %s508_s16  ;;  %p512_p12 = scmp.lt.s32.totalorder %s636_s29, %s508_s16 }
  0x98   :  { %p513_p0 = por %p512_p12, %p511_p5 }
  0x9a   :  { %p514_p6 = pnand %p513_p0, %p509_p10 }
  0x9c   :  { %517 = shalt.err (!%p514_p6)  }
  0x9d   :  { %s518_s11 = scalar_lea.vmem %s154_s6, 16  ;;  %p523_p13 = scmp.lt.s32.totalorder %s154_s6, %s619_s14 }
  0x9e   :  { %p519_p3 = scmp.ne.s32.totalorder %s154_s6, %s518_s11  ;;  %p524_p2 = scmp.lt.s32.totalorder %s645_s5, %s518_s11 }
  0xa0   :  { %p525_p7 = por %p524_p2, %p523_p13 }
  0xa2   :  { %p526_p4 = pnand %p525_p7, %p519_p3 }
  0xa4   :  { %529 = shalt.err (!%p526_p4)  }
  0xa5   :  { %156 = dma.hbm_to_vmem [thread:$0]  %s143_s15, 16, %s154_s6, [#allocation2 + $0x6] }
  0xa6   :  { %s160_s13 = scalar_select %p159_p9, %s727_s27, 0 }
  0xa7   :  { %p329_p1 = scmp.lt.s32.totalorder %s727_s27, 999  ;;  %s600_s22 = smov [#allocation5 + $0x7]  }
  0xa8   :  { %s174_s23 = sshll.u32 %s600_s22, 4  ;;  %s175_s23 = int_to_ptr.vmem [resolvable:$true] %s174_s23 }
  0xa9   :  { %s798_s13 = smov (!%p329_p1, %s160_s13), 999 }
  0xaa   :  { %s334_s24 = sshll.u32 %s798_s13, 4 }
  0xab   :  { %s164_s18 = scalar_lea.hbm %s775_s1, %s334_s24 }
  0xac   :  { %s530_s26 = scalar_lea.hbm %s164_s18, 16  ;;  %p533_p10 = scmp.lt.s32.totalorder %s164_s18, %s775_s1 }
  0xad   :  { %p531_p8 = scmp.ne.s32.totalorder %s164_s18, %s530_s26  ;;  %p534_p5 = scmp.lt.s32.totalorder %s636_s29, %s530_s26 }
  0xaf   :  { %p535_p12 = por %p534_p5, %p533_p10 }
  0xb1   :  { %p536_p0 = pnand %p535_p12, %p531_p8 }
  0xb3   :  { %539 = shalt.err (!%p536_p0)  }
  0xb4   :  { %s540_s27 = scalar_lea.vmem %s175_s23, 16  ;;  %p545_p6 = scmp.lt.s32.totalorder %s175_s23, %s619_s14 }
  0xb5   :  { %p541_p9 = scmp.ne.s32.totalorder %s175_s23, %s540_s27  ;;  %p546_p3 = scmp.lt.s32.totalorder %s645_s5, %s540_s27 }
  0xb7   :  { %p547_p13 = por %p546_p3, %p545_p6 }
  0xb9   :  { %p548_p2 = pnand %p547_p13, %p541_p9 }
  0xbb   :  { %551 = shalt.err (!%p548_p2)  }
  0xbc   :  { %177 = dma.hbm_to_vmem [thread:$0]  %s164_s18, 16, %s175_s23, [#allocation2 + $0x7] }
  0xbd   :  { %574 = dma.done.wait [#allocation2], 16 }
  0xbe   :  { %575 = vsyncadd [#allocation2], 4294967280 }
  0xbf   :  { %576 = dma.done.wait [#allocation2 + $0x1], 16 }
  0xc0   :  { %577 = vsyncadd [#allocation2 + $0x1], 4294967280 }
  0xc1   :  { %578 = dma.done.wait [#allocation2 + $0x2], 16 }
  0xc2   :  { %579 = vsyncadd [#allocation2 + $0x2], 4294967280 }
  0xc3   :  { %580 = dma.done.wait [#allocation2 + $0x3], 16 }
  0xc4   :  { %581 = vsyncadd [#allocation2 + $0x3], 4294967280 }
  0xc5   :  { %582 = dma.done.wait [#allocation2 + $0x4], 16 }
  0xc6   :  { %583 = vsyncadd [#allocation2 + $0x4], 4294967280 }
  0xc7   :  { %584 = dma.done.wait [#allocation2 + $0x5], 16 }
  0xc8   :  { %585 = vsyncadd [#allocation2 + $0x5], 4294967280 }
  0xc9   :  { %586 = dma.done.wait [#allocation2 + $0x6], 16 }
  0xca   :  { %587 = vsyncadd [#allocation2 + $0x6], 4294967280 }
  0xcb   :  { %588 = dma.done.wait [#allocation2 + $0x7], 16 }
  0xcc   :  { %589 = vsyncadd [#allocation2 + $0x7], 4294967280  ;;  %p553_p7 = scmp.ne.s32.totalorder %s619_s14, %s645_s5  ;;  %p558_p4 = scmp.lt.s32.totalorder %s645_s5, %s645_s5 }
  0xce   :  { %p559_p1 = por %p558_p4, %p391_p11 }
  0xd0   :  { %p560_p8 = pnand %p559_p1, %p553_p7 }
  0xd2   :  { %563 = shalt.err (!%p560_p8)
}
  0xd3   :  { %204 = dma.vmem_to_hbm [thread:$0]  %s619_s14, 128, %s776_s2, [#allocation6]  }
  0xd4   :  { %590 = dma.done.wait [#allocation6], 128  }
  0xd5   :  { %591 = vsyncadd [#allocation6], 4294967168 }
  0xd6   :  { %208 = vsyncpa [#allocation6], 1 }
  0xd7   :  { %209 = vsyncmov [#allocation2] }
  0xda   :  { %s210_s3 = vpop.sfrf %209 }
  0xdb   :  { %p335_p10 = scmp.ne.s32.totalorder %s210_s3, 0 }
  0xdd   :  { %214 = shalt.err (%p335_p10)  }
  0xde   :  { %216 = vsyncmov [#allocation2 + $0x1] }
  0xe1   :  { %s217_s4 = vpop.sfrf %216 }
  0xe2   :  { %p336_p5 = scmp.ne.s32.totalorder %s217_s4, 0 }
  0xe4   :  { %221 = shalt.err (%p336_p5)  }
  0xe5   :  { %223 = vsyncmov [#allocation2 + $0x2] }
  0xe8   :  { %s224_s5 = vpop.sfrf %223 }
  0xe9   :  { %p337_p11 = scmp.ne.s32.totalorder %s224_s5, 0 }
  0xeb   :  { %228 = shalt.err (%p337_p11)  }
  0xec   :  { %230 = vsyncmov [#allocation2 + $0x3] }
  0xef   :  { %s231_s6 = vpop.sfrf %230 }
  0xf0   :  { %p338_p12 = scmp.ne.s32.totalorder %s231_s6, 0 }
  0xf2   :  { %235 = shalt.err (%p338_p12)  }
  0xf3   :  { %237 = vsyncmov [#allocation2 + $0x4] }
  0xf6   :  { %s238_s2 = vpop.sfrf %237 }
  0xf7   :  { %p339_p0 = scmp.ne.s32.totalorder %s238_s2, 0 }
  0xf9   :  { %242 = shalt.err (%p339_p0)  }
  0xfa   :  { %244 = vsyncmov [#allocation2 + $0x5] }
  0xfd   :  { %s245_s14 = vpop.sfrf %244 }
  0xfe   :  { %p340_p9 = scmp.ne.s32.totalorder %s245_s14, 0 }
 0x100   :  { %249 = shalt.err (%p340_p9)  }
 0x101   :  { %251 = vsyncmov [#allocation2 + $0x6] }
 0x104   :  { %s252_s7 = vpop.sfrf %251 }
 0x105   :  { %p341_p6 = scmp.ne.s32.totalorder %s252_s7, 0 }
 0x107   :  { %256 = shalt.err (%p341_p6)  }
 0x108   :  { %258 = vsyncmov [#allocation2 + $0x7] }
 0x10b   :  { %s259_s8 = vpop.sfrf %258 }
 0x10c   :  { %p342_p3 = scmp.ne.s32.totalorder %s259_s8, 0 }
 0x10e   :  { %263 = shalt.err (%p342_p3)  }

</bundles_post_ra>
